<compile_context>
chip_gen: v7x
topology: tpu7x:2x2x1
jax: 0.10.0
libtpu: 0.0.40
codegen_flags: <defaults>
</compile_context>

<pallas_src>
import functools

import jax
import jax.numpy as jnp
from jax.experimental import pallas as pl
from jax.experimental.pallas import tpu as pltpu


_VMEM_LIMIT_BYTES = 48 * 1024 * 1024        # safe on v5e/v6e/v7x
_SINGLE_PASS_BUDGET_BYTES = 24 * 1024 * 1024  # per-step block budget for single pass
_TN_MAX = 8192                                # lane-tile cap for the two-pass path


def _row_tile(dtype):
    # Sublane-dense row tile: 8 for f32, 16 for bf16/f16, 32 for int8.
    itemsize = jnp.dtype(dtype).itemsize
    return max(8, 32 // itemsize)


def _round_up(x, m):
    return ((x + m - 1) // m) * m


def _xsrelu_single_kernel(x_ref, o_ref, *, inv_n):
    # x_ref: (TB, N) block — TB samples' flattened features.
    xf = x_ref[...].astype(jnp.float32)
    ss = jnp.sum(xf * xf, axis=-1, keepdims=True)          # (TB, 1)
    rms = jnp.sqrt(ss * inv_n)                              # (TB, 1)
    o_ref[...] = jnp.maximum(xf - rms, 0.0).astype(o_ref.dtype)


def _sumsq_kernel(x_ref, ss_ref, acc_ref):
    # Pass 1: per-row sum of squares, reduced over the lane-tiled N axis.
    @pl.when(pl.program_id(1) == 0)
    def _():
        acc_ref[...] = jnp.zeros_like(acc_ref)

    xf = x_ref[...].astype(jnp.float32)
    acc_ref[...] += jnp.sum(xf * xf, axis=-1, keepdims=True)

    @pl.when(pl.program_id(1) == pl.num_programs(1) - 1)
    def _():
        ss_ref[...] = acc_ref[...]


def _apply_kernel(x_ref, ss_ref, o_ref, *, inv_n):
    # Pass 2: elementwise relu(x - rms) on a lane-dense (TB, TN) block.
    xf = x_ref[...].astype(jnp.float32)
    rms = jnp.sqrt(ss_ref[...] * inv_n)                     # (TB, 1), broadcast
    o_ref[...] = jnp.maximum(xf - rms, 0.0).astype(o_ref.dtype)


def xsrelu_noclamp(x, *, force_two_pass=False):
    """XSReLU_noclamp forward: relu(x - rms_per_sample(x)), rms over non-batch dims."""
    orig_shape = x.shape
    b = orig_shape[0]
    n = 1
    for d in orig_shape[1:]:
        n *= d
    x2d = x.reshape(b, n)

    tb = _row_tile(x.dtype)
    b_pad = _round_up(b, tb)
    inv_n = 1.0 / float(n)
    itemsize = jnp.dtype(x.dtype).itemsize

    # Per-step VMEM estimate for single pass: in + out double-buffered + f32 temp.
    single_bytes = tb * n * (2 * 2 * itemsize + 4)
    use_single = (not force_two_pass) and single_bytes <= _SINGLE_PASS_BUDGET_BYTES

    if b_pad != b:
        x2d = jnp.pad(x2d, ((0, b_pad - b), (0, 0)))

    if use_single:
        out2d = pl.pallas_call(
            functools.partial(_xsrelu_single_kernel, inv_n=inv_n),
            out_shape=jax.ShapeDtypeStruct((b_pad, n), x.dtype),
            grid_spec=pltpu.PrefetchScalarGridSpec(
                num_scalar_prefetch=0,
                grid=(b_pad // tb,),
                in_specs=[pl.BlockSpec((tb, n), lambda i: (i, 0))],
                out_specs=pl.BlockSpec((tb, n), lambda i: (i, 0)),
            ),
            compiler_params=pltpu.CompilerParams(
                dimension_semantics=("parallel",),
                vmem_limit_bytes=_VMEM_LIMIT_BYTES,
            ),
        )(x2d)
    else:
        # Two-pass path for large N: tile N lane-densely. Zero-padding is safe:
        # padded lanes add 0 to the sum of squares and produce 0 outputs.
        tn = min(_round_up(n, 128), _TN_MAX)
        n_pad = _round_up(n, tn)
        if n_pad != n:
            x2d = jnp.pad(x2d, ((0, 0), (0, n_pad - n)))
        row_tiles = b_pad // tb
        col_tiles = n_pad // tn

        # Pass 1: per-row sum of squares, f32 accumulation.
        ss = pl.pallas_call(
            _sumsq_kernel,
            out_shape=jax.ShapeDtypeStruct((b_pad, 1), jnp.float32),
            grid_spec=pltpu.PrefetchScalarGridSpec(
                num_scalar_prefetch=0,
                grid=(row_tiles, col_tiles),
                in_specs=[pl.BlockSpec((tb, tn), lambda i, j: (i, j))],
                out_specs=pl.BlockSpec((tb, 1), lambda i, j: (i, 0)),
                scratch_shapes=[pltpu.VMEM((tb, 1), jnp.float32)],
            ),
            compiler_params=pltpu.CompilerParams(
                dimension_semantics=("parallel", "arbitrary"),
                vmem_limit_bytes=_VMEM_LIMIT_BYTES,
            ),
        )(x2d)

        # Pass 2: elementwise apply.
        out2d = pl.pallas_call(
            functools.partial(_apply_kernel, inv_n=inv_n),
            out_shape=jax.ShapeDtypeStruct((b_pad, n_pad), x.dtype),
            grid_spec=pltpu.PrefetchScalarGridSpec(
                num_scalar_prefetch=0,
                grid=(row_tiles, col_tiles),
                in_specs=[
                    pl.BlockSpec((tb, tn), lambda i, j: (i, j)),
                    pl.BlockSpec((tb, 1), lambda i, j: (i, 0)),
                ],
                out_specs=pl.BlockSpec((tb, tn), lambda i, j: (i, j)),
            ),
            compiler_params=pltpu.CompilerParams(
                dimension_semantics=("parallel", "parallel"),
                vmem_limit_bytes=_VMEM_LIMIT_BYTES,
            ),
        )(x2d, ss)
        out2d = out2d[:, :n]

    out2d = out2d[:b]
    return out2d.reshape(orig_shape)


def _reference(x):
    # Pure-JAX reference mirroring the PyTorch semantics.
    b = x.shape[0]
    rms = jnp.sqrt(jnp.mean(x.reshape(b, -1).astype(jnp.float32) ** 2, axis=-1))
    rms = rms.reshape((b,) + (1,) * (x.ndim - 1))
    return jnp.maximum(x - rms, 0.0).astype(x.dtype)


if __name__ == "__main__":
    key = jax.random.PRNGKey(0)
    x = jax.random.normal(key, (2, 4, 16, 16), dtype=jnp.float32)
    ref = _reference(x)

    # Default (single-pass, sublane-dense) path.
    out = jax.block_until_ready(xsrelu_noclamp(x))
    assert out.shape == x.shape
    assert jnp.allclose(out, ref, atol=1e-5, rtol=1e-5), "single-pass mismatch"

    # Exercise the tiled two-pass (reduce + apply) path at the same small shape.
    out2 = jax.block_until_ready(xsrelu_noclamp(x, force_two_pass=True))
    assert jnp.allclose(out2, ref, atol=1e-5, rtol=1e-5), "two-pass mismatch"

    print("KERNEL_OK")
</pallas_src>

<mosaic_0001>
module attributes {stable_mosaic.version = 11 : i64} {
  func.func @_xsrelu_single_kernel(%arg0: i32, %arg1: memref<8x1024xf32, #tpu.memory_space<vmem>>, %arg2: memref<8x1024xf32, #tpu.memory_space<vmem>>) attributes {dimension_semantics = [#tpu.dimension_semantics<parallel>], iteration_bounds = array<i64: 1>, scalar_prefetch = 0 : i64, scratch_operands = 0 : i64, tpu.core_type = #tpu.core_type<tc>, window_params = [{transform_indices = @transform_0, window_bounds = array<i64: 8, 1024>}, {transform_indices = @transform_1, window_bounds = array<i64: 8, 1024>}]} {
    %c0 = arith.constant 0 : index
    %c0_0 = arith.constant 0 : index
    %0 = vector.load %arg1[%c0, %c0_0] : memref<8x1024xf32, #tpu.memory_space<vmem>>, vector<8x1024xf32>
    %1 = arith.mulf %0, %0 : vector<8x1024xf32>
    %cst = arith.constant dense<0.000000e+00> : vector<8xf32>
    %2 = vector.multi_reduction <add>, %1, %cst [1] : vector<8x1024xf32> to vector<8xf32>
    %3 = vector.shape_cast %2 : vector<8xf32> to vector<8x1xf32>
    %cst_1 = arith.constant 9.765625E-4 : f32
    %4 = vector.broadcast %cst_1 : f32 to vector<8x1xf32>
    %5 = arith.mulf %3, %4 : vector<8x1xf32>
    %6 = math.sqrt %5 : vector<8x1xf32>
    %7 = vector.broadcast %6 : vector<8x1xf32> to vector<8x1024xf32>
    %8 = arith.subf %0, %7 : vector<8x1024xf32>
    %cst_2 = arith.constant 0.000000e+00 : f32
    %9 = vector.broadcast %cst_2 : f32 to vector<8x1024xf32>
    %10 = arith.maximumf %8, %9 : vector<8x1024xf32>
    %c0_3 = arith.constant 0 : index
    %c0_4 = arith.constant 0 : index
    %11 = vector.load %arg2[%c0_3, %c0_4] : memref<8x1024xf32, #tpu.memory_space<vmem>>, vector<8x1024xf32>
    tpu.vector_store %arg2[%c0_3, %c0_4], %10 {strides = array<i32>} : memref<8x1024xf32, #tpu.memory_space<vmem>>, vector<8x1024xf32>,
    return
  }
  func.func @transform_0(%arg0: i32) -> (i32, i32) {
    %c0_i32 = arith.constant 0 : i32
    %c0_i32_0 = arith.constant 0 : i32
    return %arg0, %c0_i32 : i32, i32
  }
  func.func @transform_1(%arg0: i32) -> (i32, i32) {
    %c0_i32 = arith.constant 0 : i32
    %c0_i32_0 = arith.constant 0 : i32
    return %arg0, %c0_i32 : i32, i32
  }
}

</mosaic_0001>

<bundles_post_ra>
// kernel: tpu_custom_call.1
= control target key start
LH: loop header
LB: loop body
LE: loop exit
PB: predicated region body
PF: predicated region fallthrough
CT: control target
= control target key end

     0   :  { %6 = vsyncpa [#allocation3], 0  ;;  %s181_s0 = inlined_call_operand.hbm [shape: f32[8,1024], index: 0, kind: input, shape index: {}]   ;;  %s182_s1 = inlined_call_operand.hbm [shape: f32[8,1024], index: 1, kind: output, shape index: {}]  }
   0x1   :  { %7 = vsyncpa [#allocation4], 0  ;;  %s145_s6 = smov [#allocation2]   ;;  %s97_s10 = scalar_lea.hbm %s181_s0, 1024 }
   0x2   :  { %s14_s7 = sshll.u32 %s145_s6, 4  ;;  %p98_p0 = scmp.ne.s32.totalorder %s181_s0, %s97_s10  ;;  %s15_s7 = int_to_ptr.vmem [resolvable:$true] %s14_s7 }
   0x3   :  { %p101_p1 = scmp.lt.u32.totalorder %s97_s10, %s181_s0 }
   0x5   :  { %p103_p2 = pnand %p101_p1, %p98_p0 }
   0x7   :  { %106 = shalt.err (!%p103_p2)
}
   0x8   :  { %s107_s15 = scalar_lea.vmem %s15_s7, 1024  ;;  %p112_p4 = scmp.lt.s32.totalorder %s15_s7, %s15_s7 }
   0x9   :  { %p108_p3 = scmp.ne.s32.totalorder %s15_s7, %s107_s15  ;;  %p113_p5 = scmp.lt.s32.totalorder %s107_s15, %s107_s15 }
   0xb   :  { %p114_p6 = por %p113_p5, %p112_p4 }
   0xd   :  { %p115_p7 = pnand %p114_p6, %p108_p3 }
   0xf   :  { %118 = shalt.err (!%p115_p7)
}
  0x10   :  { %17 = dma.hbm_to_vmem [thread:$0]  %s181_s0, 1024, %s15_s7, [#allocation3]  }
  0x11   :  { %141 = dma.done.wait [#allocation3], 1024  }
  0x12   :  { %142 = vsyncadd [#allocation3], 4294966272  ;;  %v21_v0 = vld [vmem:[#allocation2] sm:$0xff]  ;;  %v22_v1 = vld [vmem:[#allocation2 + $0x8] sm:$0xff]  ;;  %s146_s0 = smov [#allocation5]  }
  0x13   :  { %v23_v2 = vld [vmem:[#allocation2 + $0x10] sm:$0xff]  ;;  %v24_v3 = vld [vmem:[#allocation2 + $0x18] sm:$0xff]  ;;  %v29_v4 = vmul.f32 %v21_v0, %v21_v0  ;;  %v30_v5 = vmul.f32 %v22_v1, %v22_v1  ;;  %v25_v7 = vld [vmem:[#allocation2 + $0x20] sm:$0xff]  ;;  %s84_s18 = sshll.u32 %s146_s0, 4  ;;  %s85_s18 = int_to_ptr.vmem [resolvable:$true] %s84_s18 }
  0x14   :  { %v31_v6 = vmul.f32 %v23_v2, %v23_v2  ;;  %v32_v8 = vmul.f32 %v24_v3, %v24_v3  ;;  %v26_v10 = vld [vmem:[#allocation2 + $0x28] sm:$0xff]  ;;  %v33_v11 = vmul.f32 %v25_v7, %v25_v7  ;;  %v27_v13 = vld [vmem:[#allocation2 + $0x30] sm:$0xff]  ;;  %v28_v16 = vld [vmem:[#allocation2 + $0x38] sm:$0xff]  ;;  %s119_s19 = scalar_lea.vmem %s85_s18, 1024  ;;  %p124_p9 = scmp.lt.s32.totalorder %s85_s18, %s85_s18 }
  0x15   :  { %v37_v9 = vadd.f32 %v30_v5, %v29_v4  ;;  %v34_v14 = vmul.f32 %v26_v10, %v26_v10  ;;  %v35_v17 = vmul.f32 %v27_v13, %v27_v13  ;;  %v36_v19 = vmul.f32 %v28_v16, %v28_v16  ;;  %p120_p8 = scmp.ne.s32.totalorder %s85_s18, %s119_s19  ;;  %p125_p10 = scmp.lt.s32.totalorder %s119_s19, %s119_s19 }
  0x17   :  { %v38_v12 = vadd.f32 %v37_v9, %v31_v6  ;;  %p126_p11 = por %p125_p10, %p124_p9 }
  0x19   :  { %v39_v15 = vadd.f32 %v38_v12, %v32_v8  ;;  %p127_p12 = pnand %p126_p11, %p120_p8 }
  0x1b   :  { %v40_v18 = vadd.f32 %v39_v15, %v33_v11 }
  0x1d   :  { %v41_v20 = vadd.f32 %v40_v18, %v34_v14 }
  0x1f   :  { %v42_v21 = vadd.f32 %v41_v20, %v35_v17 }
  0x21   :  { %v43_v22 = vadd.f32 %v42_v21, %v36_v19 }
  0x23   :  { %44 = vadd.xlane.f32.xlu0 %v43_v22 }
  0xb0   :  { %v45_v23 = vpop.xlane.xlu0 %44 }
  0xb1   :  { %v46_v24 = vmul.f32 0.0009765625, %v45_v23 }
  0xb3   :  { %95 = vrsqrt.f32 %v46_v24  ;;  %vm49_vm0 = vcmp.eq.f32.partialorder %v46_v24, inf  ;;  %v52_v27 = vand.u32 2147483648, %v46_v24  ;;  %vm51_vm1 = vcmp.eq.f32.partialorder %v46_v24, 0.0 }
  0xbd   :  { %v96_v25 = vpop.eup %95 }
  0xbe   :  { %v48_v26 = vmul.f32 %v96_v25, %v46_v24 }
  0xc0   :  { %v50_v28 = vsel %vm49_vm0, %v46_v24, %v48_v26 }
  0xc1   :  { %v53_v29 = vsel %vm51_vm1, %v52_v27, %v50_v28 }
  0xc2   :  { %v54_v30 = vsub.f32 %v21_v0, %v53_v29  ;;  %v55_v31 = vsub.f32 %v22_v1, %v53_v29  ;;  %v56_v32 = vsub.f32 %v23_v2, %v53_v29  ;;  %v57_v33 = vsub.f32 %v24_v3, %v53_v29 }
  0xc3   :  { %v58_v34 = vsub.f32 %v25_v7, %v53_v29  ;;  %v59_v35 = vsub.f32 %v26_v10, %v53_v29  ;;  %v60_v36 = vsub.f32 %v27_v13, %v53_v29  ;;  %v61_v37 = vsub.f32 %v28_v16, %v53_v29 }
  0xc4   :  { %v62_v38 = vmax.f32 %v54_v30, 0.0  ;;  %v63_v39 = vmax.f32 %v55_v31, 0.0  ;;  %v64_v40 = vmax.f32 %v56_v32, 0.0  ;;  %v65_v41 = vmax.f32 %v57_v33, 0.0 }
  0xc5   :  { %v66_v42 = vmax.f32 %v58_v34, 0.0  ;;  %v67_v43 = vmax.f32 %v59_v35, 0.0  ;;  %v68_v44 = vmax.f32 %v60_v36, 0.0  ;;  %v69_v45 = vmax.f32 %v61_v37, 0.0 }
  0xc6   :  { %70 = vst [vmem:[#allocation5] sm:$0xff] %v62_v38  ;;  %71 = vst [vmem:[#allocation5 + $0x8] sm:$0xff] %v63_v39 }
  0xc7   :  { %72 = vst [vmem:[#allocation5 + $0x10] sm:$0xff] %v64_v40  ;;  %73 = vst [vmem:[#allocation5 + $0x18] sm:$0xff] %v65_v41 }
  0xc8   :  { %74 = vst [vmem:[#allocation5 + $0x20] sm:$0xff] %v66_v42  ;;  %75 = vst [vmem:[#allocation5 + $0x28] sm:$0xff] %v67_v43 }
  0xc9   :  { %76 = vst [vmem:[#allocation5 + $0x30] sm:$0xff] %v68_v44  ;;  %77 = vst [vmem:[#allocation5 + $0x38] sm:$0xff] %v69_v45 }
  0xca   :  { %130 = shalt.err (!%p127_p12)
}
  0xcb   :  { %s131_s22 = scalar_lea.hbm %s182_s1, 1024 }
  0xcc   :  { %p132_p13 = scmp.ne.s32.totalorder %s182_s1, %s131_s22  ;;  %p135_p0 = scmp.lt.u32.totalorder %s131_s22, %s182_s1 }
  0xce   :  { %p137_p1 = pnand %p135_p0, %p132_p13 }
  0xd0   :  { %140 = shalt.err (!%p137_p1)
}
  0xd1   :  { %87 = dma.vmem_to_hbm [thread:$0]  %s85_s18, 1024, %s182_s1, [#allocation4]  }
  0xd2   :  { %143 = dma.done.wait [#allocation4], 1024  }
  0xd3   :  { %144 = vsyncadd [#allocation4], 4294966272 }
  0xd4   :  { %91 = vsyncpa [#allocation3], 1 }
  0xd5   :  { %92 = vsyncpa [#allocation4], 1 }

</bundles_post_ra>
